<compile_context>
chip_gen: v5e
topology: v5e:2x2
jax: 0.10.0
libtpu: 0.0.40
codegen_flags: <defaults>
</compile_context>

<pallas_src>
import functools

import jax
import jax.numpy as jnp
from jax.experimental import pallas as pl
from jax.experimental.pallas import tpu as pltpu


def _gru_encoder_kernel(tok_ref,   # SMEM (1,) int32  scalar prefetch (token id)
                        emb_ref,   # VMEM (V, 1, Xp) bf16  resident augmented table
                        h_ref,     # VMEM (1, 2H) f32      [h_fwd | h_rev]
                        w_ref,     # VMEM (Xp+2H, 8H) bf16 fused weight (+bias row)
                        hid_ref,   # VMEM out (2, 1, H) f32
                        out_ref,   # VMEM out (1, 1, H) f32  (h_fwd + h_rev)
                        *, hidden_size):
    H = hidden_size

    h32 = h_ref[...]                                      # (1, 2H) f32 carry
    # In-VMEM gather of one embedding row; row layout = [emb | 1.0 | zero-pad].
    x_aug = emb_ref[tok_ref[0]].astype(jnp.float32)       # (1, Xp)
    xh = jnp.concatenate([x_aug, h32], axis=1).astype(jnp.bfloat16)   # (1, Xp+2H)

    # Single bf16 MXU matmul, f32 accumulation. Biases ride on the "ones" row.
    # Column blocks (2H each): [ r | z | n_ih | n_hh ], each = [fwd(H) | rev(H)].
    g = jnp.dot(xh, w_ref[...], preferred_element_type=jnp.float32)   # (1, 8H)

    r = jax.nn.sigmoid(g[:, 0 * H:2 * H])
    z = jax.nn.sigmoid(g[:, 2 * H:4 * H])
    n = jnp.tanh(g[:, 4 * H:6 * H] + r * g[:, 6 * H:8 * H])
    h_new = (1.0 - z) * n + z * h32                       # (1, 2H) f32

    h_f = h_new[:, :H]
    h_r = h_new[:, H:]
    hid_ref[0] = h_f                                      # (1, H) row stores,
    hid_ref[1] = h_r                                      # no axis-0 concat
    out_ref[0] = h_f + h_r


def prepare_params(base):
    """base (per-direction, torch-style pre-transposed) -> fused kernel params."""
    V, E = base["embedding"].shape
    H = base["w_hh_t"].shape[1]
    f32 = jnp.float32

    # Augmented embedding rows: [emb(E) | 1.0 | zero-pad] padded to a lane-friendly
    # width so the fused contraction dim is a nice multiple (E=32,H=32 -> K=128).
    x_pad = ((E + 1 + 63) // 64) * 64
    emb_aug = jnp.zeros((V, x_pad), f32)
    emb_aug = emb_aug.at[:, :E].set(base["embedding"].astype(f32))
    emb_aug = emb_aug.at[:, E].set(1.0)
    emb_aug = emb_aug.astype(jnp.bfloat16).reshape(V, 1, x_pad)

    wih = base["w_ih_t"].astype(f32).reshape(2, E, 3, H)   # [d, e, g, j]
    whh = base["w_hh_t"].astype(f32).reshape(2, H, 3, H)   # [d, i, g, j]
    bih = base["b_ih"].astype(f32).reshape(2, 3, H)        # [d, g, j]
    bhh = base["b_hh"].astype(f32).reshape(2, 3, H)

    # x rows (E, 8H): W_ih for r/z/n_ih blocks, zeros for n_hh block.
    wx = wih.transpose(1, 2, 0, 3).reshape(E, 6 * H)       # col = g*2H + d*H + j
    wx = jnp.concatenate([wx, jnp.zeros((E, 2 * H), f32)], axis=1)

    # Bias row (1, 8H): (b_ih+b_hh) for r/z, b_ih for n_ih, b_hh for n_hh.
    b_row = jnp.concatenate(
        [(bih[:, 0] + bhh[:, 0]).reshape(1, 2 * H),
         (bih[:, 1] + bhh[:, 1]).reshape(1, 2 * H),
         bih[:, 2].reshape(1, 2 * H),
         bhh[:, 2].reshape(1, 2 * H)], axis=1)

    # h rows (2H, 8H): block-diagonal over directions; zeros for the n_ih block.
    g_sel = jnp.stack([whh[:, :, 0], whh[:, :, 1],
                       jnp.zeros_like(whh[:, :, 0]), whh[:, :, 2]],
                      axis=2)                              # [d, i, c4, j]
    wh = jnp.einsum("dicj,dn->dicnj", g_sel, jnp.eye(2, dtype=f32))
    wh = wh.reshape(2 * H, 8 * H)

    # Assemble fused weight rows to match xh = [x | 1 | pad | h_fwd | h_rev].
    w_fused = jnp.zeros((x_pad + 2 * H, 8 * H), f32)
    w_fused = w_fused.at[:E].set(wx)
    w_fused = w_fused.at[E].set(b_row[0])
    w_fused = w_fused.at[x_pad:].set(wh)
    w_fused = w_fused.astype(jnp.bfloat16)

    return {"emb_aug": emb_aug, "w_fused": w_fused,
            "V": V, "E": E, "H": H, "x_pad": x_pad}


def encoder_face_forward(token, hidden, kp):
    """token: scalar int32, hidden: (2,1,H) f32 -> (outputs (1,1,H), hidden (2,1,H))."""
    V, H, x_pad = kp["V"], kp["H"], kp["x_pad"]
    K = x_pad + 2 * H

    h_flat = hidden.astype(jnp.float32).reshape(1, 2 * H)
    # Clamp token id: the in-kernel gather indexes VMEM directly, so it must stay
    # in-bounds (PyTorch would raise on OOB ids; here they map to a valid row).
    tok = jnp.clip(jnp.asarray(token, jnp.int32).reshape(1), 0, V - 1)

    kernel = functools.partial(_gru_encoder_kernel, hidden_size=H)
    hid_out, sum_out = pl.pallas_call(
        kernel,
        out_shape=(jax.ShapeDtypeStruct((2, 1, H), jnp.float32),
                   jax.ShapeDtypeStruct((1, 1, H), jnp.float32)),
        grid_spec=pltpu.PrefetchScalarGridSpec(
            num_scalar_prefetch=1,
            grid=(1,),
            in_specs=[
                # Whole (tiny) embedding table resident in VMEM; no DMA depends
                # on the token value.
                pl.BlockSpec((V, 1, x_pad), lambda i, tok: (0, 0, 0)),
                pl.BlockSpec((1, 2 * H), lambda i, tok: (0, 0)),
                pl.BlockSpec((K, 8 * H), lambda i, tok: (0, 0)),
            ],
            out_specs=[
                pl.BlockSpec((2, 1, H), lambda i, tok: (0, 0, 0)),
                pl.BlockSpec((1, 1, H), lambda i, tok: (0, 0, 0)),
            ],
        ),
        compiler_params=pltpu.CompilerParams(
            dimension_semantics=("arbitrary",)),
    )(tok, kp["emb_aug"], h_flat, kp["w_fused"])

    return sum_out, hid_out


def reference_forward(token, hidden, base):
    """Pure-JAX reference matching torch.nn.GRU(bidirectional=True), seq_len=1."""
    H = base["w_hh_t"].shape[1]
    hp = jax.lax.Precision.HIGHEST
    x = base["embedding"].astype(jnp.float32)[token].reshape(1, -1)
    hs = []
    for d in range(2):
        h_prev = hidden[d].astype(jnp.float32)                     # (1, H)
        gi = jnp.dot(x, base["w_ih_t"][d].astype(jnp.float32),
                     precision=hp) + base["b_ih"][d]
        gh = jnp.dot(h_prev, base["w_hh_t"][d].astype(jnp.float32),
                     precision=hp) + base["b_hh"][d]
        r = jax.nn.sigmoid(gi[:, :H] + gh[:, :H])
        z = jax.nn.sigmoid(gi[:, H:2 * H] + gh[:, H:2 * H])
        n = jnp.tanh(gi[:, 2 * H:] + r * gh[:, 2 * H:])
        hs.append((1.0 - z) * n + z * h_prev)
    outputs = (hs[0] + hs[1]).reshape(1, 1, H)
    hidden_out = jnp.stack(hs, axis=0)                             # (2, 1, H)
    return outputs, hidden_out


if __name__ == "__main__":
    # Small shapes consistent with the module: vocab=16, embedding=32, hidden=32.
    V, E, H = 16, 32, 32
    key = jax.random.PRNGKey(0)
    ks = jax.random.split(key, 6)
    s = 1.0 / (H ** 0.5)
    # Weights/embedding stored as bf16 (what the kernel DMAs); biases/hidden f32.
    base = {
        "embedding": jax.random.normal(ks[0], (V, E), jnp.float32).astype(jnp.bfloat16),
        "w_ih_t": jax.random.uniform(ks[1], (2, E, 3 * H), jnp.float32, -s, s).astype(jnp.bfloat16),
        "w_hh_t": jax.random.uniform(ks[2], (2, H, 3 * H), jnp.float32, -s, s).astype(jnp.bfloat16),
        "b_ih": jax.random.uniform(ks[3], (2, 3 * H), jnp.float32, -s, s),
        "b_hh": jax.random.uniform(ks[4], (2, 3 * H), jnp.float32, -s, s),
    }
    kernel_params = prepare_params(base)

    token = jnp.array(3, dtype=jnp.int32)          # input_data: single token id
    hidden0 = jax.random.normal(ks[5], (2, 1, H), jnp.float32)

    outputs, hidden_out = encoder_face_forward(token, hidden0, kernel_params)
    jax.block_until_ready((outputs, hidden_out))

    ref_out, ref_hid = reference_forward(token, hidden0, base)
    assert outputs.shape == (1, 1, H) and hidden_out.shape == (2, 1, H)
    # Tolerance accounts for bf16 storage of weights/biases and the bf16 cast of h
    # on the fused MXU path (f32 accumulation); an f32 PyTorch-faithful reference
    # differs at the ~1e-3 level. Real layout/fusion bugs would show as >1e-1.
    assert jnp.allclose(outputs, ref_out, atol=3e-3, rtol=3e-3), "output mismatch vs reference"
    assert jnp.allclose(hidden_out, ref_hid, atol=3e-3, rtol=3e-3), "hidden mismatch vs reference"
    print("KERNEL_OK")
</pallas_src>

<mosaic_0001>
module attributes {stable_mosaic.version = 11 : i64} {
  func.func @_gru_encoder_kernel(%arg0: i32, %arg1: memref<1xi32, #tpu.memory_space<smem>>, %arg2: memref<16x1x64xbf16, #tpu.memory_space<vmem>>, %arg3: memref<1x64xf32, #tpu.memory_space<vmem>>, %arg4: memref<128x256xbf16, #tpu.memory_space<vmem>>, %arg5: memref<2x1x32xf32, #tpu.memory_space<vmem>>, %arg6: memref<1x1x32xf32, #tpu.memory_space<vmem>>) attributes {dimension_semantics = [#tpu.dimension_semantics<arbitrary>], iteration_bounds = array<i64: 1>, scalar_prefetch = 1 : i64, scratch_operands = 0 : i64, tpu.core_type = #tpu.core_type<tc>, window_params = [{pipeline_mode = #tpu.pipeline_mode<synchronous>, transform_indices = @transform_0, window_bounds = array<i64: 16, 1, 64>}, {pipeline_mode = #tpu.pipeline_mode<synchronous>, transform_indices = @transform_1, window_bounds = array<i64: 1, 64>}, {pipeline_mode = #tpu.pipeline_mode<synchronous>, transform_indices = @transform_2, window_bounds = array<i64: 128, 256>}, {pipeline_mode = #tpu.pipeline_mode<synchronous>, transform_indices = @transform_3, window_bounds = array<i64: 2, 1, 32>}, {pipeline_mode = #tpu.pipeline_mode<synchronous>, transform_indices = @transform_4, window_bounds = array<i64: 1, 1, 32>}]} {
    %c0 = arith.constant 0 : index
    %c0_0 = arith.constant 0 : index
    %0 = vector.load %arg3[%c0, %c0_0] : memref<1x64xf32, #tpu.memory_space<vmem>>, vector<1x64xf32>
    %c0_1 = arith.constant 0 : index
    %1 = memref.load %arg1[%c0_1] : memref<1xi32, #tpu.memory_space<smem>>
    %2 = arith.index_cast %1 : i32 to index
    %c0_2 = arith.constant 0 : index
    %c0_3 = arith.constant 0 : index
    %3 = vector.load %arg2[%2, %c0_2, %c0_3] : memref<16x1x64xbf16, #tpu.memory_space<vmem>>, vector<1x1x64xbf16>
    %4 = vector.shape_cast %3 : vector<1x1x64xbf16> to vector<1x64xbf16>
    %5 = arith.extf %4 : vector<1x64xbf16> to vector<1x64xf32>
    %6 = tpu.concatenate %5, %0 in 1 : vector<1x64xf32>, vector<1x64xf32> -> vector<1x128xf32>
    %7 = arith.truncf %6 : vector<1x128xf32> to vector<1x128xbf16>
    %c0_4 = arith.constant 0 : index
    %c0_5 = arith.constant 0 : index
    %8 = vector.load %arg4[%c0_4, %c0_5] : memref<128x256xbf16, #tpu.memory_space<vmem>>, vector<128x256xbf16>
    %cst = arith.constant dense<0.000000e+00> : vector<1x256xf32>
    %9 = tpu.matmul %7, %8, %cst {dimension_numbers = #tpu.dot_dimension_numbers<[1], [0], [0], [1], [0, 0, 1, 1], [], []>} : vector<1x128xbf16>, vector<128x256xbf16>, vector<1x256xf32> -> vector<1x256xf32>
    %10 = vector.extract_strided_slice %9 {offsets = [0, 0], sizes = [1, 64], strides = [1, 1]} : vector<1x256xf32> to vector<1x64xf32>
    %11 = arith.negf %10 : vector<1x64xf32>
    %12 = math.exp %11 : vector<1x64xf32>
    %cst_6 = arith.constant 1.000000e+00 : f32
    %13 = vector.broadcast %cst_6 : f32 to vector<1x64xf32>
    %14 = arith.addf %13, %12 : vector<1x64xf32>
    %15 = arith.divf %13, %14 : vector<1x64xf32>
    %16 = vector.extract_strided_slice %9 {offsets = [0, 64], sizes = [1, 64], strides = [1, 1]} : vector<1x256xf32> to vector<1x64xf32>
    %17 = arith.negf %16 : vector<1x64xf32>
    %18 = math.exp %17 : vector<1x64xf32>
    %cst_7 = arith.constant 1.000000e+00 : f32
    %19 = vector.broadcast %cst_7 : f32 to vector<1x64xf32>
    %20 = arith.addf %19, %18 : vector<1x64xf32>
    %21 = arith.divf %19, %20 : vector<1x64xf32>
    %22 = vector.extract_strided_slice %9 {offsets = [0, 128], sizes = [1, 64], strides = [1, 1]} : vector<1x256xf32> to vector<1x64xf32>
    %23 = vector.extract_strided_slice %9 {offsets = [0, 192], sizes = [1, 64], strides = [1, 1]} : vector<1x256xf32> to vector<1x64xf32>
    %24 = arith.mulf %15, %23 : vector<1x64xf32>
    %25 = arith.addf %22, %24 : vector<1x64xf32>
    %26 = math.tanh %25 : vector<1x64xf32>
    %cst_8 = arith.constant 1.000000e+00 : f32
    %27 = vector.broadcast %cst_8 : f32 to vector<1x64xf32>
    %28 = arith.subf %27, %21 : vector<1x64xf32>
    %29 = arith.mulf %28, %26 : vector<1x64xf32>
    %30 = arith.mulf %21, %0 : vector<1x64xf32>
    %31 = arith.addf %29, %30 : vector<1x64xf32>
    %32 = vector.extract_strided_slice %31 {offsets = [0, 0], sizes = [1, 32], strides = [1, 1]} : vector<1x64xf32> to vector<1x32xf32>
    %33 = vector.extract_strided_slice %31 {offsets = [0, 32], sizes = [1, 32], strides = [1, 1]} : vector<1x64xf32> to vector<1x32xf32>
    %c0_9 = arith.constant 0 : index
    %c0_10 = arith.constant 0 : index
    %c0_11 = arith.constant 0 : index
    %34 = vector.load %arg5[%c0_9, %c0_10, %c0_11] : memref<2x1x32xf32, #tpu.memory_space<vmem>>, vector<1x1x32xf32>
    %35 = vector.shape_cast %34 : vector<1x1x32xf32> to vector<1x32xf32>
    %36 = vector.shape_cast %32 : vector<1x32xf32> to vector<1x1x32xf32>
    tpu.vector_store %arg5[%c0_9, %c0_10, %c0_11], %36 {strides = array<i32>} : memref<2x1x32xf32, #tpu.memory_space<vmem>>, vector<1x1x32xf32>,
    %c1 = arith.constant 1 : index
    %c0_12 = arith.constant 0 : index
    %c0_13 = arith.constant 0 : index
    %37 = vector.load %arg5[%c1, %c0_12, %c0_13] : memref<2x1x32xf32, #tpu.memory_space<vmem>>, vector<1x1x32xf32>
    %38 = vector.shape_cast %37 : vector<1x1x32xf32> to vector<1x32xf32>
    %39 = vector.shape_cast %33 : vector<1x32xf32> to vector<1x1x32xf32>
    tpu.vector_store %arg5[%c1, %c0_12, %c0_13], %39 {strides = array<i32>} : memref<2x1x32xf32, #tpu.memory_space<vmem>>, vector<1x1x32xf32>,
    %40 = arith.addf %32, %33 : vector<1x32xf32>
    %c0_14 = arith.constant 0 : index
    %c0_15 = arith.constant 0 : index
    %c0_16 = arith.constant 0 : index
    %41 = vector.load %arg6[%c0_14, %c0_15, %c0_16] : memref<1x1x32xf32, #tpu.memory_space<vmem>>, vector<1x1x32xf32>
    %42 = vector.shape_cast %41 : vector<1x1x32xf32> to vector<1x32xf32>
    %43 = vector.shape_cast %40 : vector<1x32xf32> to vector<1x1x32xf32>
    tpu.vector_store %arg6[%c0_14, %c0_15, %c0_16], %43 {strides = array<i32>} : memref<1x1x32xf32, #tpu.memory_space<vmem>>, vector<1x1x32xf32>,
    return
  }
  func.func @transform_0(%arg0: i32, %arg1: memref<1xi32, #tpu.memory_space<smem>>) -> (i32, i32, i32) {
    %c0_i32 = arith.constant 0 : i32
    %c0_i32_0 = arith.constant 0 : i32
    %c0_i32_1 = arith.constant 0 : i32
    %c0_i32_2 = arith.constant 0 : i32
    return %c0_i32, %c0_i32_0, %c0_i32_1 : i32, i32, i32
  }
  func.func @transform_1(%arg0: i32, %arg1: memref<1xi32, #tpu.memory_space<smem>>) -> (i32, i32) {
    %c0_i32 = arith.constant 0 : i32
    %c0_i32_0 = arith.constant 0 : i32
    %c0_i32_1 = arith.constant 0 : i32
    return %c0_i32, %c0_i32_0 : i32, i32
  }
  func.func @transform_2(%arg0: i32, %arg1: memref<1xi32, #tpu.memory_space<smem>>) -> (i32, i32) {
    %c0_i32 = arith.constant 0 : i32
    %c0_i32_0 = arith.constant 0 : i32
    %c0_i32_1 = arith.constant 0 : i32
    return %c0_i32, %c0_i32_0 : i32, i32
  }
  func.func @transform_3(%arg0: i32, %arg1: memref<1xi32, #tpu.memory_space<smem>>) -> (i32, i32, i32) {
    %c0_i32 = arith.constant 0 : i32
    %c0_i32_0 = arith.constant 0 : i32
    %c0_i32_1 = arith.constant 0 : i32
    %c0_i32_2 = arith.constant 0 : i32
    return %c0_i32, %c0_i32_0, %c0_i32_1 : i32, i32, i32
  }
  func.func @transform_4(%arg0: i32, %arg1: memref<1xi32, #tpu.memory_space<smem>>) -> (i32, i32, i32) {
    %c0_i32 = arith.constant 0 : i32
    %c0_i32_0 = arith.constant 0 : i32
    %c0_i32_1 = arith.constant 0 : i32
    %c0_i32_2 = arith.constant 0 : i32
    return %c0_i32, %c0_i32_0, %c0_i32_1 : i32, i32, i32
  }
}

</mosaic_0001>

<bundles_post_ra>
// kernel: tpu_custom_call.1
= control target key start
LH: loop header
LB: loop body
LE: loop exit
PB: predicated region body
PF: predicated region fallthrough
CT: control target
= control target key end

     0   :  { %12 = vsyncpa [#allocation5], 0  ;;  %s503_s0 = inlined_call_operand.<no memory space> [shape: s32[1], index: 0, kind: input, shape index: {}]   ;;  %s504_s1 = inlined_call_operand.vmem [shape: bf16[16,1,64], index: 1, kind: input, shape index: {}]   ;;  %s505_s2 = inlined_call_operand.vmem [shape: f32[1,64], index: 2, kind: input, shape index: {}]   ;;  %s506_s3 = inlined_call_operand.hbm [shape: bf16[128,256], index: 3, kind: input, shape index: {}]   ;;  %s507_s4 = inlined_call_operand.hbm [shape: f32[2,1,32], index: 4, kind: output, shape index: {0}]   ;;  %s508_s5 = inlined_call_operand.hbm [shape: f32[1,1,32], index: 5, kind: output, shape index: {1}]  }
   0x1   :  { %13 = vsyncpa [#allocation6], 0 }
   0x2   :  { %14 = vsyncpa [#allocation9], 0  ;;  %s23_s20 = sshll.u32 %s506_s3, 4  ;;  %s437_s21 = smov [#allocation4]   ;;  %s24_s20 = int_to_ptr.hbm [resolvable:$true] %s23_s20 }
   0x3   :  { %s25_s22 = sshll.u32 %s437_s21, 4  ;;  %s438_s23 = smov 128   ;;  %s26_s22 = int_to_ptr.vmem [resolvable:$true] %s25_s22 }
   0x4   :  { %s439_s24 = smov 8  }
   0x5   :  { %31 = dma.hbm_to_vmem [thread:$0]  %s24_s20, 2048, %s26_s22, [#allocation5], %s438_s23, %s438_s23, %s439_s24  }
   0x6   :  { %431 = dma.done.wait [#allocation5], 2048  }
   0x7   :  { %432 = vsyncadd [#allocation5], 4294965248  ;;  %v352_v0 = vld [vmem:[%s505_s2] ss:$0 sm:$0xff]  ;;  %v319_v1 = vld [vmem:[#allocation4 + $0x70] sm:$0xf]  ;;  %s38_s30 = scalar_lea.vmem %s504_s1, %s503_s0 }
   0x8   :  { %v341_v2 = vld [vmem:[#allocation4 + $0x74] sm:$0xf0]  ;;  %v340_v3 = vld [vmem:[#allocation4 + $0x74] sm:$0xf]  ;;  %v321_v4 = vld [vmem:[#allocation4 + $0x78] sm:$0xf0] }
   0x9   :  { %s440_s27 = smov 64   ;;  %v320_v5 = vor.u32 %v341_v2, %v319_v1  ;;  %v324_v6 = vor.u32 %v340_v3, %v321_v4  ;;  %v311_v7 = vld [vmem:[#allocation4 + $0x60] sm:$0xf]  ;;  %v339_v8 = vld [vmem:[#allocation4 + $0x64] sm:$0xf0]  ;;  %vm46_vm0 = vcmask 523264  }
   0xa   :  { %43 = vrot.lane.b32.xlu0 %v352_v0, %s440_s27  ;;  %v338_v9 = vld [vmem:[#allocation4 + $0x64] sm:$0xf]  ;;  %v313_v10 = vld [vmem:[#allocation4 + $0x68] sm:$0xf0]  ;;  %v312_v11 = vor.u32 %v339_v8, %v311_v7  ;;  %v303_v13 = vld [vmem:[#allocation4 + $0x50] sm:$0xf] }
   0xb   :  { %145 = vmatpush.bf16.msra.mxu0 %v320_v5  ;;  %158 = vmatpush.bf16.msra.mxu1 %v324_v6  ;;  %v316_v12 = vor.u32 %v338_v9, %v313_v10  ;;  %v337_v14 = vld [vmem:[#allocation4 + $0x54] sm:$0xf0]  ;;  %v336_v15 = vld [vmem:[#allocation4 + $0x54] sm:$0xf]  ;;  %v305_v16 = vld [vmem:[#allocation4 + $0x58] sm:$0xf0] }
   0xc   :  { %v304_v17 = vor.u32 %v337_v14, %v303_v13  ;;  %v308_v18 = vor.u32 %v336_v15, %v305_v16  ;;  %v295_v19 = vld [vmem:[#allocation4 + $0x40] sm:$0xf]  ;;  %v335_v20 = vld [vmem:[#allocation4 + $0x44] sm:$0xf0]  ;;  %v334_v21 = vld [vmem:[#allocation4 + $0x44] sm:$0xf] }
   0xd   :  { %v297_v22 = vld [vmem:[#allocation4 + $0x48] sm:$0xf0]  ;;  %v296_v23 = vor.u32 %v335_v20, %v295_v19  ;;  %v287_v25 = vld [vmem:[#allocation4 + $0x30] sm:$0xf]  ;;  %v333_v26 = vld [vmem:[#allocation4 + $0x34] sm:$0xf0] }
   0xe   :  { %v300_v24 = vor.u32 %v334_v21, %v297_v22  ;;  %v332_v27 = vld [vmem:[#allocation4 + $0x34] sm:$0xf]  ;;  %v289_v28 = vld [vmem:[#allocation4 + $0x38] sm:$0xf0]  ;;  %v288_v29 = vor.u32 %v333_v26, %v287_v25  ;;  %v279_v31 = vld [vmem:[#allocation4 + $0x20] sm:$0xf] }
   0xf   :  { %146 = vmatpush.bf16.msra.mxu0 %v312_v11  ;;  %159 = vmatpush.bf16.msra.mxu1 %v316_v12  ;;  %v292_v30 = vor.u32 %v332_v27, %v289_v28  ;;  %v331_v32 = vld [vmem:[#allocation4 + $0x24] sm:$0xf0]  ;;  %v330_v33 = vld [vmem:[#allocation4 + $0x24] sm:$0xf]  ;;  %v281_v34 = vld [vmem:[#allocation4 + $0x28] sm:$0xf0] }
  0x10   :  { %v280_v35 = vor.u32 %v331_v32, %v279_v31  ;;  %v284_v36 = vor.u32 %v330_v33, %v281_v34  ;;  %v271_v37 = vld [vmem:[#allocation4 + $0x10] sm:$0xf]  ;;  %v329_v38 = vld [vmem:[#allocation4 + $0x14] sm:$0xf0]  ;;  %v328_v39 = vld [vmem:[#allocation4 + $0x14] sm:$0xf] }
  0x11   :  { %v273_v40 = vld [vmem:[#allocation4 + $0x18] sm:$0xf0]  ;;  %v272_v41 = vor.u32 %v329_v38, %v271_v37  ;;  %v263_v43 = vld [vmem:[#allocation4] sm:$0xf]  ;;  %v327_v44 = vld [vmem:[#allocation4 + $0x4] sm:$0xf0] }
  0x12   :  { %v276_v42 = vor.u32 %v328_v39, %v273_v40  ;;  %v326_v45 = vld [vmem:[#allocation4 + $0x4] sm:$0xf]  ;;  %v264_v46 = vor.u32 %v327_v44, %v263_v43  ;;  %v265_v47 = vld [vmem:[#allocation4 + $0x8] sm:$0xf0]  ;;  %v39_v49 = vld [vmem:[%s38_s30] sm:$0x1] }
  0x13   :  { %147 = vmatpush.bf16.msra.mxu0 %v304_v17  ;;  %160 = vmatpush.bf16.msra.mxu1 %v308_v18  ;;  %v268_v48 = vor.u32 %v326_v45, %v265_v47  ;;  %v40_v50 = vunpack.c.l.bf16 %v39_v49  ;;  %s441_s0 = smov 96   ;;  %s442_s1 = smov 32   ;;  %vm209_vm5 = vcmask 253952  }
  0x14   :  { %s443_s6 = smov [#allocation7]   ;;  %s231_s10 = sshll.u32 %s507_s4, 4  ;;  %s232_s10 = int_to_ptr.hbm [resolvable:$true] %s231_s10 }
  0x15   :  { %s229_s7 = sshll.u32 %s443_s6, 4  ;;  %s444_s11 = smov 16   ;;  %s230_s7 = int_to_ptr.vmem [resolvable:$true] %s229_s7 }
  0x16   :  { %s445_s12 = smov 1   ;;  %s446_s13 = smov [#allocation8]  }
  0x17   :  { %148 = vmatpush.bf16.msra.mxu0 %v296_v23  ;;  %161 = vmatpush.bf16.msra.mxu1 %v300_v24  ;;  %s243_s14 = sshll.u32 %s446_s13, 4  ;;  %s245_s17 = sshll.u32 %s508_s5, 4  ;;  %s244_s14 = int_to_ptr.vmem [resolvable:$true] %s243_s14  ;;  %s246_s17 = int_to_ptr.hbm [resolvable:$true] %s245_s17 }
  0x1b   :  { %149 = vmatpush.bf16.msra.mxu0 %v288_v29  ;;  %162 = vmatpush.bf16.msra.mxu1 %v292_v30 }
  0x1f   :  { %150 = vmatpush.bf16.msra.mxu0 %v280_v35  ;;  %163 = vmatpush.bf16.msra.mxu1 %v284_v36 }
  0x23   :  { %151 = vmatpush.bf16.msra.mxu0 %v272_v41  ;;  %164 = vmatpush.bf16.msra.mxu1 %v276_v42 }
  0x27   :  { %152 = vmatpush.bf16.msra.mxu0 %v264_v46  ;;  %165 = vmatpush.bf16.msra.mxu1 %v268_v48 }
  0x7c   :  { %v44_v51 = vpop.permute.xlu0 %43 }
  0x7d   :  { %v47_v52 = vsel %vm46_vm0, %v40_v50, %v44_v51 }
  0x7e   :  { %v48_v53 = vpack.c.bf16 %v47_v52, %v47_v52 }
  0x80   :  { %153 = vmatmul.bf16.vlgmr.msra.gmra.mxu0 %v48_v53  ;;  %166 = vmatmul.bf16.vlgmr.msra.gmra.mxu1 %v48_v53 }
  0xfd   :  { %v154_v54 = vpop.f32.mrf.mxu0  ;;  %v167_v55 = vpop.f32.mrf.mxu1 }
  0xfe   :  { %191 = vrot.lane.b32.xlu0 %v167_v55, %s440_s27  ;;  %v325_v58 = vmul.f32 -1.442695, %v154_v54 }
 0x100   :  { %353 = vpow2.f32 %v325_v58 }
 0x105   :  { %v156_v56 = vpop.f32.mrf.mxu0  ;;  %v169_v57 = vpop.f32.mrf.mxu1 }
 0x106   :  { %v354_v59 = vpop.eup %353 }
 0x107   :  { %v174_v60 = vadd.f32 1.0, %v354_v59 }
 0x109   :  { %355 = vrcp.f32 %v174_v60  ;;  %v186_v2 = vand.u32 2147483648, %v174_v60  ;;  %vm180_vm2 = vweird.f32 %v174_v60  ;;  %v184_v3 = vand.u32 2147483647, %v174_v60 }
 0x10b   :  { %v187_v5 = vor.u32 1.1754944e-38, %v186_v2  ;;  %vm185_vm4 = vcmp.eq.f32.partialorder %v184_v3, 8.507059e+37 }
 0x10f   :  { %v356_v61 = vpop.eup %355 }
 0x110   :  { %v176_v62 = vmul.f32 %v356_v61, %v174_v60  ;;  %vm181_vm1 = vweird.f32 %v356_v61 }
 0x111   :  { %vm182_vm3 = vmor %vm180_vm2, %vm181_vm1 }
 0x112   :  { %v177_v63 = vsub.f32 1.0, %v176_v62 }
 0x114   :  { %v178_v0 = vmul.f32 %v356_v61, %v177_v63 }
 0x116   :  { %v179_v1 = vadd.f32 %v356_v61, %v178_v0 }
 0x118   :  { %v183_v4 = vsel %vm182_vm3, %v356_v61, %v179_v1 }
 0x119   :  { %v188_v7 = vsel %vm185_vm4, %v187_v5, %v183_v4 }
 0x11a   :  { %v197_v11 = vsub.f32 1.0, %v188_v7  ;;  %v203_v13 = vmul.f32 %v188_v7, %v44_v51 }
 0x170   :  { %v192_v6 = vpop.permute.xlu0 %191 }
 0x171   :  { %v194_v8 = vmul.f32 %v192_v6, %v188_v7 }
 0x173   :  { %v195_v9 = vadd.f32 %v194_v8, %v167_v55 }
 0x175   :  { %357 = vtanh.f32 %v195_v9 }
 0x17b   :  { %v358_v10 = vpop.eup %357 }
 0x17c   :  { %199 = vrot.lane.b32.xlu1 %v358_v10, %s440_s27 }
 0x1ee   :  { %v200_v12 = vpop.permute.xlu1 %199 }
 0x1ef   :  { %v202_v14 = vmul.f32 %v200_v12, %v197_v11 }
 0x1f1   :  { %v204_v15 = vadd.f32 %v203_v13, %v202_v14 }
 0x1f3   :  { %206 = vrot.lane.b32.xlu2 %v204_v15, %s440_s27  ;;  %216 = vrot.lane.b32.xlu1 %v204_v15, %s441_s0 }
 0x1fb   :  { %211 = vrot.lane.b32.xlu2 %v204_v15, %s442_s1 }
 0x24d   :  { %v207_v16 = vpop.permute.xlu2 %206 }
 0x24e   :  { %210 = vst.msk [vmem:[#allocation7] sm:$0x1] %vm209_vm5, %v207_v16 }
 0x255   :  { %v212_v17 = vpop.permute.xlu2 %211 }
 0x256   :  { %215 = vst.msk [vmem:[#allocation7 + $0x1] sm:$0x1] %vm209_vm5, %v212_v17 }
 0x257   :  { %237 = dma.vmem_to_hbm [thread:$0]  %s230_s7, 32, %s232_s10, [#allocation6], %s444_s11, %s444_s11, %s445_s12  }
 0x265   :  { %v217_v18 = vpop.permute.xlu1 %216 }
 0x266   :  { %v219_v19 = vadd.f32 %v217_v18, %v204_v15 }
 0x268   :  { %221 = vrot.lane.b32.xlu0 %v219_v19, %s440_s27 }
 0x2da   :  { %v222_v20 = vpop.permute.xlu0 %221 }
 0x2db   :  { %224 = vst.msk [vmem:[#allocation8] sm:$0x1] %vm209_vm5, %v222_v20 }
 0x2dc   :  { %248 = dma.vmem_to_hbm [thread:$0]  %s244_s14, 16, %s246_s17, [#allocation9]  }
 0x2dd   :  { %433 = dma.done.wait [#allocation6], 32  }
 0x2de   :  { %434 = vsyncadd [#allocation6], 4294967264 }
 0x2df   :  { %435 = dma.done.wait [#allocation9], 16  }
 0x2e0   :  { %436 = vsyncadd [#allocation9], 4294967280 }
 0x2e1   :  { %257 = vsyncpa [#allocation5], 1 }
 0x2e2   :  { %258 = vsyncpa [#allocation6], 1 }
 0x2e3   :  { %259 = vsyncpa [#allocation9], 1 }

</bundles_post_ra>
